<compile_context>
chip_gen: v6e
topology: v6e:2x2x1
jax: 0.10.0
libtpu: 0.0.40
codegen_flags: <defaults>
</compile_context>

<pallas_src>
import functools

import jax
import jax.numpy as jnp
from jax.experimental import pallas as pl
from jax.experimental.pallas import tpu as pltpu


# ----------------------------- Pallas kernel ---------------------------------
def _conv3x3_kernel(x_ref, w_ref, o_ref):
    """Fused 3x3 'same' conv for one batch element, NHWC, dw folded into K.

    x_ref: (H+2, W+2, Cin)   bf16, spatially pre-padded input
    w_ref: (3, 3*Cin, Cout)  bf16, w_ref[dh, dw*Cin + c, o] = W_torch[o, c, dh, dw]
    o_ref: (H*W, Cout)       f32, rows in (h, w) raster order
    """
    Hp, Wp, Cin = x_ref.shape
    H, W = Hp - 2, Wp - 2
    Cout = o_ref.shape[-1]

    xp = x_ref[...]                                           # (H+2, W+2, Cin)

    # Fold the three dw (column) taps into the contraction dim: one lane-concat
    # instead of 9 per-tap relayouts.  slab[h, w, dw*Cin + c] = xp[h, w+dw, c].
    slab = jnp.concatenate([xp[:, dw:dw + W, :] for dw in range(3)], axis=-1)
    # Single relayout: merge rows into the sublane axis ONCE.
    slab = slab.reshape((H + 2) * W, 3 * Cin)                 # ((H+2)*W, 3*Cin)

    acc = jnp.zeros((H * W, Cout), jnp.float32)
    for dh in range(3):                                       # 3 MXU matmuls, K = 3*Cin
        # dh*W is a multiple of 8 (W=16) -> aligned, cheap sublane slice.
        patch = slab[dh * W: dh * W + H * W]                  # (H*W, 3*Cin)
        acc = acc + jnp.dot(patch, w_ref[dh],
                            preferred_element_type=jnp.float32)

    o_ref[...] = acc.astype(o_ref.dtype)                      # lane-dense f32 store


# ----------------------------- forward pass ----------------------------------
@functools.partial(jax.jit, static_argnames=("upscale",))
def upsample_forward(x_nchw, w_taps, upscale=2):
    """Upsample.forward: Conv2d(k=3,s=1,p=1,bias=False) -> PixelShuffle(2)."""
    B, Cin, H, W = x_nchw.shape
    Cout = w_taps.shape[-1]
    r = upscale

    # One NCHW -> NHWC transpose + pad + bf16 cast (XLA fuses these).
    x_nhwc = jnp.transpose(x_nchw, (0, 2, 3, 1))
    xp = jnp.pad(x_nhwc, ((0, 0), (1, 1), (1, 1), (0, 0))).astype(jnp.bfloat16)

    y = pl.pallas_call(
        _conv3x3_kernel,
        out_shape=jax.ShapeDtypeStruct((B, H * W, Cout), jnp.float32),
        grid=(B,),
        in_specs=[
            pl.BlockSpec((None, H + 2, W + 2, Cin), lambda b: (b, 0, 0, 0)),
            pl.BlockSpec((3, 3 * Cin, Cout), lambda b: (0, 0, 0)),
        ],
        out_specs=pl.BlockSpec((None, H * W, Cout), lambda b: (b, 0, 0)),
        compiler_params=pltpu.CompilerParams(
            dimension_semantics=("parallel",),          # v7x: one batch per TC
            vmem_limit_bytes=32 * 1024 * 1024,
        ),
    )(xp, w_taps)                                        # (B, H*W, 2*n_feat)

    # PixelShuffle(r) + NHWC->NCHW collapsed into ONE transpose.
    # y channel index = c*r*r + i*r + j (PyTorch order); out[b,c,h*r+i,w*r+j].
    Cfin = Cout // (r * r)
    y = y.reshape(B, H, W, Cfin, r, r)                   # free bitcast of flat rows
    y = jnp.transpose(y, (0, 3, 1, 4, 2, 5))             # (B, Cfin, H, r, W, r)
    return y.reshape(B, Cfin, H * r, W * r)


def relay_conv_weight(w_oihw):
    """PyTorch Conv2d weight (Cout, Cin, 3, 3) -> (3, 3*Cin, Cout) bf16, once at init.

    Tap layout matches the kernel's slab: index along 3*Cin is (dw major, c minor).
    """
    Cout, Cin = w_oihw.shape[0], w_oihw.shape[1]
    w = jnp.transpose(w_oihw, (2, 3, 1, 0))              # (dh, dw, Cin, Cout)
    return w.reshape(3, 3 * Cin, Cout).astype(jnp.bfloat16)


# ----------------------------- pure-JAX reference ----------------------------
def upsample_ref(x_nchw, w_oihw, upscale=2):
    y = jax.lax.conv_general_dilated(
        x_nchw, w_oihw, window_strides=(1, 1), padding=((1, 1), (1, 1)),
        dimension_numbers=("NCHW", "OIHW", "NCHW"),
        precision=jax.lax.Precision.HIGHEST)
    B, C, H, W = y.shape
    r = upscale
    y = y.reshape(B, C // (r * r), r, r, H, W)
    y = jnp.transpose(y, (0, 1, 4, 2, 5, 3))
    return y.reshape(B, C // (r * r), H * r, W * r)


# ----------------------------- main -------------------------------------------
if __name__ == "__main__":
    # Upsample(n_feat=64) on a (2, 64, 16, 16) input -> (2, 32, 32, 32)
    n_feat, B, H, W = 64, 2, 16, 16
    key = jax.random.PRNGKey(0)
    kx, kw = jax.random.split(key)
    x = jax.random.normal(kx, (B, n_feat, H, W), jnp.float32)
    # nn.Conv2d(n_feat, 2*n_feat, kernel_size=3, stride=1, padding=1, bias=False)
    w = jax.random.normal(kw, (2 * n_feat, n_feat, 3, 3), jnp.float32) * 0.05

    w_taps = relay_conv_weight(w)                        # (3, 3*Cin, Cout), once at init

    out = jax.block_until_ready(upsample_forward(x, w_taps))
    assert out.shape == (B, n_feat // 2, 2 * H, 2 * W), out.shape
    assert bool(jnp.all(jnp.isfinite(out)))

    # Apples-to-apples check: same bf16 quantization of inputs, f32 accumulation.
    xq = x.astype(jnp.bfloat16).astype(jnp.float32)
    wq = w.astype(jnp.bfloat16).astype(jnp.float32)
    ref_q = jax.block_until_ready(upsample_ref(xq, wq))
    assert bool(jnp.allclose(out, ref_q, rtol=1e-2, atol=1e-2)), (
        "max abs err vs quantized ref", float(jnp.max(jnp.abs(out - ref_q))))

    # Loose sanity check vs the full-f32 PyTorch-equivalent reference
    # (tolerance absorbs the deliberate bf16 MXU-input cast).
    ref = jax.block_until_ready(upsample_ref(x, w))
    assert bool(jnp.allclose(out, ref, rtol=5e-2, atol=5e-2)), (
        "max abs err vs f32 ref", float(jnp.max(jnp.abs(out - ref))))

    print("KERNEL_OK")
</pallas_src>

<mosaic_0001>
module attributes {stable_mosaic.version = 11 : i64} {
  func.func @_conv3x3_kernel(%arg0: i32, %arg1: memref<1x18x18x64xbf16, #tpu.memory_space<vmem>>, %arg2: memref<3x192x128xbf16, #tpu.memory_space<vmem>>, %arg3: memref<1x256x128xf32, #tpu.memory_space<vmem>>) attributes {dimension_semantics = [#tpu.dimension_semantics<parallel>], iteration_bounds = array<i64: 2>, scalar_prefetch = 0 : i64, scratch_operands = 0 : i64, tpu.core_type = #tpu.core_type<tc>, window_params = [{transform_indices = @transform_0, window_bounds = array<i64: 1, 18, 18, 64>}, {pipeline_mode = #tpu.pipeline_mode<synchronous>, transform_indices = @transform_1, window_bounds = array<i64: 3, 192, 128>}, {transform_indices = @transform_2, window_bounds = array<i64: 1, 256, 128>}]} {
    %c0 = arith.constant 0 : index
    %c0_0 = arith.constant 0 : index
    %c0_1 = arith.constant 0 : index
    %c0_2 = arith.constant 0 : index
    %0 = vector.load %arg1[%c0, %c0_0, %c0_1, %c0_2] : memref<1x18x18x64xbf16, #tpu.memory_space<vmem>>, vector<1x18x18x64xbf16>
    %1 = vector.shape_cast %0 : vector<1x18x18x64xbf16> to vector<18x18x64xbf16>
    %2 = vector.extract_strided_slice %1 {offsets = [0, 0, 0], sizes = [18, 16, 64], strides = [1, 1, 1]} : vector<18x18x64xbf16> to vector<18x16x64xbf16>
    %3 = vector.extract_strided_slice %1 {offsets = [0, 1, 0], sizes = [18, 16, 64], strides = [1, 1, 1]} : vector<18x18x64xbf16> to vector<18x16x64xbf16>
    %4 = vector.extract_strided_slice %1 {offsets = [0, 2, 0], sizes = [18, 16, 64], strides = [1, 1, 1]} : vector<18x18x64xbf16> to vector<18x16x64xbf16>
    %5 = tpu.concatenate %2, %3, %4 in 2 : vector<18x16x64xbf16>, vector<18x16x64xbf16>, vector<18x16x64xbf16> -> vector<18x16x192xbf16>
    %6 = vector.shape_cast %5 : vector<18x16x192xbf16> to vector<288x192xbf16>
    %cst = arith.constant 0.000000e+00 : f32
    %7 = vector.broadcast %cst : f32 to vector<256x128xf32>
    %8 = vector.extract_strided_slice %6 {offsets = [0, 0], sizes = [256, 192], strides = [1, 1]} : vector<288x192xbf16> to vector<256x192xbf16>
    %c0_3 = arith.constant 0 : index
    %c0_4 = arith.constant 0 : index
    %c0_5 = arith.constant 0 : index
    %9 = vector.load %arg2[%c0_3, %c0_4, %c0_5] : memref<3x192x128xbf16, #tpu.memory_space<vmem>>, vector<1x192x128xbf16>
    %10 = vector.shape_cast %9 : vector<1x192x128xbf16> to vector<192x128xbf16>
    %cst_6 = arith.constant dense<0.000000e+00> : vector<256x128xf32>
    %11 = tpu.matmul %8, %10, %cst_6 {dimension_numbers = #tpu.dot_dimension_numbers<[1], [0], [0], [1], [0, 0, 1, 1], [], []>} : vector<256x192xbf16>, vector<192x128xbf16>, vector<256x128xf32> -> vector<256x128xf32>
    %12 = arith.addf %7, %11 : vector<256x128xf32>
    %13 = vector.extract_strided_slice %6 {offsets = [16, 0], sizes = [256, 192], strides = [1, 1]} : vector<288x192xbf16> to vector<256x192xbf16>
    %c1 = arith.constant 1 : index
    %c0_7 = arith.constant 0 : index
    %c0_8 = arith.constant 0 : index
    %14 = vector.load %arg2[%c1, %c0_7, %c0_8] : memref<3x192x128xbf16, #tpu.memory_space<vmem>>, vector<1x192x128xbf16>
    %15 = vector.shape_cast %14 : vector<1x192x128xbf16> to vector<192x128xbf16>
    %cst_9 = arith.constant dense<0.000000e+00> : vector<256x128xf32>
    %16 = tpu.matmul %13, %15, %cst_9 {dimension_numbers = #tpu.dot_dimension_numbers<[1], [0], [0], [1], [0, 0, 1, 1], [], []>} : vector<256x192xbf16>, vector<192x128xbf16>, vector<256x128xf32> -> vector<256x128xf32>
    %17 = arith.addf %12, %16 : vector<256x128xf32>
    %18 = vector.extract_strided_slice %6 {offsets = [32, 0], sizes = [256, 192], strides = [1, 1]} : vector<288x192xbf16> to vector<256x192xbf16>
    %c2 = arith.constant 2 : index
    %c0_10 = arith.constant 0 : index
    %c0_11 = arith.constant 0 : index
    %19 = vector.load %arg2[%c2, %c0_10, %c0_11] : memref<3x192x128xbf16, #tpu.memory_space<vmem>>, vector<1x192x128xbf16>
    %20 = vector.shape_cast %19 : vector<1x192x128xbf16> to vector<192x128xbf16>
    %cst_12 = arith.constant dense<0.000000e+00> : vector<256x128xf32>
    %21 = tpu.matmul %18, %20, %cst_12 {dimension_numbers = #tpu.dot_dimension_numbers<[1], [0], [0], [1], [0, 0, 1, 1], [], []>} : vector<256x192xbf16>, vector<192x128xbf16>, vector<256x128xf32> -> vector<256x128xf32>
    %22 = arith.addf %17, %21 : vector<256x128xf32>
    %c0_13 = arith.constant 0 : index
    %c0_14 = arith.constant 0 : index
    %c0_15 = arith.constant 0 : index
    %23 = vector.load %arg3[%c0_13, %c0_14, %c0_15] : memref<1x256x128xf32, #tpu.memory_space<vmem>>, vector<1x256x128xf32>
    %24 = vector.shape_cast %23 : vector<1x256x128xf32> to vector<256x128xf32>
    %25 = vector.shape_cast %22 : vector<256x128xf32> to vector<1x256x128xf32>
    tpu.vector_store %arg3[%c0_13, %c0_14, %c0_15], %25 {strides = array<i32>} : memref<1x256x128xf32, #tpu.memory_space<vmem>>, vector<1x256x128xf32>,
    return
  }
  func.func @transform_0(%arg0: i32) -> (i32, i32, i32, i32) {
    %c0_i32 = arith.constant 0 : i32
    %c0_i32_0 = arith.constant 0 : i32
    %c0_i32_1 = arith.constant 0 : i32
    %c0_i32_2 = arith.constant 0 : i32
    return %arg0, %c0_i32, %c0_i32_0, %c0_i32_1 : i32, i32, i32, i32
  }
  func.func @transform_1(%arg0: i32) -> (i32, i32, i32) {
    %c0_i32 = arith.constant 0 : i32
    %c0_i32_0 = arith.constant 0 : i32
    %c0_i32_1 = arith.constant 0 : i32
    %c0_i32_2 = arith.constant 0 : i32
    return %c0_i32, %c0_i32_0, %c0_i32_1 : i32, i32, i32
  }
  func.func @transform_2(%arg0: i32) -> (i32, i32, i32) {
    %c0_i32 = arith.constant 0 : i32
    %c0_i32_0 = arith.constant 0 : i32
    %c0_i32_1 = arith.constant 0 : i32
    return %arg0, %c0_i32, %c0_i32_0 : i32, i32, i32
  }
}

</mosaic_0001>

<bundles_post_ra>
// kernel: upsample_forward.1
= control target key start
LH: loop header
LB: loop body
LE: loop exit
PB: predicated region body
PF: predicated region fallthrough
CT: control target
= control target key end

     0   :  { %7 = vsyncpa [#allocation3], 0  ;;  %s1990_s9 = smov 0   ;;  %s2682_s0 = inlined_call_operand.vmem [shape: bf16[2,18,18,64], index: 0, kind: input, shape index: {}]   ;;  %s2683_s1 = inlined_call_operand.hbm [shape: bf16[3,192,128], index: 1, kind: input, shape index: {}]   ;;  %s2684_s2 = inlined_call_operand.vmem [shape: f32[2,256,128], index: 2, kind: output, shape index: {}]  }
   0x1 LB: > { %s1679_s10 = sadd.s32 4294967295, %s1968_s9   ;;  %p1681_p0 = scmp.ge.s32.totalorder %s1968_s9, 1  ;;  %s1968_s9 = sphi %s1990_s9, %s13_s9  }
   0x2   : > { %p91_p1 = scmp.lt.s32.totalorder %s1968_s9, 3  ;;  %s1970_s11 = smov [#allocation2]  }
   0x3   : > { %s103_s12 = sshll.u32 %s1970_s11, 4  ;;  %p1845_p3 = scmp.eq.s32.totalorder %s1679_s10, 0  ;;  %s104_s12 = int_to_ptr.vmem [resolvable:$true] %s103_s12 }
   0x4   : > { %p1998_p2 = pnand %p1681_p0, %p91_p1  ;;  %s1943_s14 = scalar_lea.vmem %s104_s12, 4608 }
   0x5   : > { %p1944_p7 = scmp.ne.s32.totalorder %s104_s12, %s1943_s14  ;;  %p1951_p10 = scmp.lt.s32.totalorder %s104_s12, %s104_s12 }
   0x6   : > { %p1841_p4 = pneg %p1998_p2  ;;  %p1952_p11 = scmp.lt.s32.totalorder %s1943_s14, %s1943_s14 }
   0x8   : > { %p1842_p5 = pnand %p1845_p3, %p1841_p4  ;;  %p1953_p12 = por %p1952_p11, %p1951_p10 }
   0xa   : > { %p1934_p6 = pneg %p1842_p5 }
   0xc   : > { %p1946_p8 = pnand %p1944_p7, %p1934_p6 }
   0xe   : > { %p1947_p9 = pneg %p1946_p8 }
  0x10   : > { %p1954_p13 = pnand %p1953_p12, %p1947_p9 }
  0x12   : > { %1957 = shalt.err (!%p1954_p13)
}
  0x13   : > { %s1971_s15 = smov 64   ;;  %s1972_s16 = smov 4  }
  0x14   : > { %1844 = dma.hbm_to_vmem [thread:$0]  (!%p1842_p5), %s2683_s1, 4608, %s104_s12, [#allocation3], %s1971_s15, %s1971_s15, %s1972_s16  }
  0x15   : > { %127 = sbr.rel (%p1998_p2) target bundleno = 545 (0x221), region = 28 }
  0x1a   : > { %1963 = dma.done.wait (%p1845_p3), [#allocation3], 4608  }
  0x1b   : > { %1965 = vsyncadd (%p1845_p3), [#allocation3], 4294962688  ;;  %p149_p0 = scmp.lt.s32.totalorder %s1679_s10, 1  ;;  %v1973_v0 = vmov 0   ;;  %vm358_vm0 = vsmask.f32 7424 }
  0x1c   : > { %1812 = vmatprep.subr.bf16.mxu1 %v1973_v0  ;;  %890 = vmatprep.subr.bf16.mxu0 %v1973_v0  ;;  %s1974_s23 = smov 64   ;;  %vm611_vm1 = vcmask 1046528   ;;  %vm666_vm2 = vcmask 523264  }
  0x1d   : > { %s2687_s10 = smov (!%p149_p0, %s1679_s10), 1 }
  0x1e   : > { %s1836_s19 = smul.u32 216, %s2687_s10  ;;  %s1811_s24 = sshll.u32 %s2687_s10, 8 }
  0x1f   : > { %s2614_s27 = scalar_lea.vmem %s2684_s2, %s1811_s24 }
  0x20   : > { %s2020_s22 = scalar_lea.vmem %s2682_s0, %s1836_s19 }
  0x21   : > { %v2023_v1 = vld [vmem:[%s2020_s22 + $0x6c] sm:$0xff]   ;;  %v2026_v2 = vld [vmem:[%s2020_s22 + $0x74] ss:$0 sps:$4 sm:$0x11]   ;;  %v2041_v13 = vld [vmem:[%s2020_s22 + $0x78] sm:$0xff]  }
  0x22   : > { %v2029_v3 = vld [vmem:[%s2020_s22 + $0xc] sm:$0xff]   ;;  %v468_v4 = vshrl.u32 %v2023_v1, 16  ;;  %v470_v5 = vshll.u32 %v2023_v1, 16  ;;  %v475_v6 = vshll.u32 %v2026_v2, 16  ;;  %v480_v18 = vshrl.u32 %v2041_v13, 16  ;;  %v2049_v20 = vld [vmem:[%s2020_s22 + $0x18] sm:$0xff]  }
  0x23   : > { %v2035_v7 = vld [vmem:[%s2020_s22 + $0x14] ss:$0 sps:$4 sm:$0x11]   ;;  %v372_v8 = vshrl.u32 %v2029_v3, 16  ;;  %v374_v9 = vshll.u32 %v2029_v3, 16  ;;  %v482_v19 = vshll.u32 %v2041_v13, 16 }
  0x24   : > { %v472_v10 = vrot.slane %v470_v5, 1  ;;  %v477_v11 = vrot.slane %v475_v6, 1  ;;  %v379_v12 = vshll.u32 %v2035_v7, 16  ;;  %v2044_v15 = vld [vmem:[%s2020_s22 + $0x80] ss:$0 sps:$4 sm:$0x11]  }
  0x25   : > { %v376_v14 = vrot.slane %v374_v9, 1  ;;  %v487_v22 = vshll.u32 %v2044_v15, 16  ;;  %v2053_v23 = vld [vmem:[%s2020_s22 + $0x20] ss:$0 sps:$4 sm:$0x11]   ;;  %v484_v25 = vrot.slane %v482_v19, 1 }
  0x26   : > { %v473_v16 = vor.u32 %v472_v10, %v468_v4  ;;  %v381_v17 = vrot.slane %v379_v12, 1  ;;  %v384_v26 = vshrl.u32 %v2049_v20, 16  ;;  %v386_v27 = vshll.u32 %v2049_v20, 16  ;;  %v2059_v28 = vld [vmem:[%s2020_s22 + $0x84] sm:$0xff]   ;;  %v2082_v46 = vld [vmem:[%s2020_s22 + $0x90] sm:$0xff]   ;;  %v2101_v62 = vld [vmem:[%s2020_s22 + $0x9c] sm:$0xff]  }
  0x27   : > { %v377_v21 = vor.u32 %v376_v14, %v372_v8  ;;  %v489_v30 = vrot.slane %v487_v22, 1  ;;  %v391_v31 = vshll.u32 %v2053_v23, 16  ;;  %v485_v32 = vor.u32 %v484_v25, %v480_v18  ;;  %v2065_v34 = vld [vmem:[%s2020_s22 + $0x8c] ss:$0 sps:$4 sm:$0x11]   ;;  %v2070_v38 = vld [vmem:[%s2020_s22 + $0x24] sm:$0xff]  }
  0x28   : > { %v478_v24 = vsel %vm358_vm0, %v473_v16, %v477_v11  ;;  %v388_v33 = vrot.slane %v386_v27, 1  ;;  %v492_v35 = vshrl.u32 %v2059_v28, 16  ;;  %v494_v36 = vshll.u32 %v2059_v28, 16  ;;  %v2077_v43 = vld [vmem:[%s2020_s22 + $0x2c] ss:$0 sps:$4 sm:$0x11]  }
  0x29   : > { %593 = vrot.lane.b32.xlu0 %v478_v24, %s1974_s23  ;;  %v382_v29 = vsel %vm358_vm0, %v377_v21, %v381_v17  ;;  %v393_v37 = vrot.slane %v391_v31, 1  ;;  %v490_v39 = vsel %vm358_vm0, %v485_v32, %v489_v30  ;;  %v499_v42 = vshll.u32 %v2065_v34, 16  ;;  %v2086_v50 = vld [vmem:[%s2020_s22 + $0x30] sm:$0xff]   ;;  %v2090_v53 = vld [vmem:[%s2020_s22 + $0x98] ss:$0 sps:$4 sm:$0x11]  }
  0x2a   : > { %v389_v40 = vor.u32 %v388_v33, %v384_v26  ;;  %v496_v41 = vrot.slane %v494_v36, 1  ;;  %595 = vrot.lane.b32.xlu1 %v490_v39, %s1974_s23  ;;  %v396_v44 = vshrl.u32 %v2070_v38, 16  ;;  %v398_v45 = vshll.u32 %v2070_v38, 16  ;;  %v2104_v4 = vld [vmem:[%s2020_s22 + $0x38] ss:$0 sps:$4 sm:$0x11]  }
  0x2b   : > { %v501_v49 = vrot.slane %v499_v42, 1  ;;  %v403_v52 = vshll.u32 %v2077_v43, 16  ;;  %v504_v54 = vshrl.u32 %v2082_v46, 16  ;;  %v506_v56 = vshll.u32 %v2082_v46, 16  ;;  %v2117_v22 = vld [vmem:[%s2020_s22 + $0x3c] sm:$0xff]   ;;  %v2124_v25 = vld [vmem:[%s2020_s22 + $0xa8] sm:$0xff]  }
  0x2c   : > { %v394_v47 = vsel %vm358_vm0, %v389_v40, %v393_v37  ;;  %v497_v48 = vor.u32 %v496_v41, %v492_v35  ;;  %v400_v51 = vrot.slane %v398_v45, 1  ;;  %v408_v57 = vshrl.u32 %v2086_v50, 16  ;;  %v2109_v11 = vld [vmem:[%s2020_s22 + $0xa4] ss:$0 sps:$4 sm:$0x11]   ;;  %v2138_v39 = vld [vmem:[%s2020_s22 + $0x48] sm:$0xff]  }
  0x2d   : > { %577 = vrot.lane.b32.xlu0 %v382_v29, %s1974_s23  ;;  %v405_v59 = vrot.slane %v403_v52, 1  ;;  %v511_v60 = vshll.u32 %v2090_v53, 16  ;;  %v410_v61 = vshll.u32 %v2086_v50, 16  ;;  %v508_v63 = vrot.slane %v506_v56, 1 }
  0x2e   : > { %v502_v55 = vsel %vm358_vm0, %v497_v48, %v501_v49  ;;  %579 = vrot.lane.b32.xlu1 %v394_v47, %s1974_s23  ;;  %v401_v58 = vor.u32 %v400_v51, %v396_v44  ;;  %v415_v10 = vshll.u32 %v2104_v4, 16  ;;  %v516_v12 = vshrl.u32 %v2101_v62, 16  ;;  %v2121_v24 = vld [vmem:[%s2020_s22 + $0x44] ss:$0 sps:$4 sm:$0x11]   ;;  %v2148_v49 = vld [vmem:[%s2020_s22 + $0xb4] sm:$0xff]  }
  0x2f   : > { %v513_v6 = vrot.slane %v511_v60, 1  ;;  %v412_v8 = vrot.slane %v410_v61, 1  ;;  %v509_v9 = vor.u32 %v508_v63, %v504_v54  ;;  %v518_v14 = vshll.u32 %v2101_v62, 16  ;;  %v2132_v33 = vld [vmem:[%s2020_s22 + $0xb0] ss:$0 sps:$4 sm:$0x11]  }
  0x30   : > { %v406_v5 = vsel %vm358_vm0, %v401_v58, %v405_v59  ;;  %v417_v18 = vrot.slane %v415_v10, 1  ;;  %v523_v21 = vshll.u32 %v2109_v11, 16  ;;  %v420_v30 = vshrl.u32 %v2117_v22, 16  ;;  %v2143_v44 = vld [vmem:[%s2020_s22 + $0x50] ss:$0 sps:$4 sm:$0x11]  }
  0x31   : > { %597 = vrot.lane.b32.xlu0 %v502_v55, %s1974_s23  ;;  %v413_v16 = vor.u32 %v412_v8, %v408_v57  ;;  %v514_v17 = vsel %vm358_vm0, %v509_v9, %v513_v6  ;;  %v520_v19 = vrot.slane %v518_v14, 1  ;;  %v422_v31 = vshll.u32 %v2117_v22, 16  ;;  %v2152_v57 = vld [vmem:[%s2020_s22 + $0xbc] ss:$0 sps:$4 sm:$0x11]   ;;  %v2158_v63 = vld [vmem:[%s2020_s22 + $0x54] sm:$0xff]  }
  0x32   : > { %581 = vrot.lane.b32.xlu1 %v406_v5, %s1974_s23  ;;  %v525_v29 = vrot.slane %v523_v21, 1  ;;  %v427_v32 = vshll.u32 %v2121_v24, 16  ;;  %v528_v35 = vshrl.u32 %v2124_v25, 16  ;;  %v530_v37 = vshll.u32 %v2124_v25, 16  ;;  %v2174_v21 = vld [vmem:[%s2020_s22 + $0x60] sm:$0xff]  }
  0x33   : > { %v418_v26 = vsel %vm358_vm0, %v413_v16, %v417_v18  ;;  %v521_v27 = vor.u32 %v520_v19, %v516_v12  ;;  %v424_v40 = vrot.slane %v422_v31, 1  ;;  %v535_v42 = vshll.u32 %v2132_v33, 16  ;;  %v2165_v10 = vld [vmem:[%s2020_s22 + $0x5c] ss:$0 sps:$4 sm:$0x11]   ;;  %v2170_v16 = vld [vmem:[%s2020_s22 + $0xc0] sm:$0xff]  }
  0x34   : > { %v429_v41 = vrot.slane %v427_v32, 1  ;;  %v532_v45 = vrot.slane %v530_v37, 1  ;;  %v432_v47 = vshrl.u32 %v2138_v39, 16  ;;  %v434_v48 = vshll.u32 %v2138_v39, 16 }
  0x35   : > { %599 = vrot.lane.b32.xlu0 %v514_v17, %s1974_s23  ;;  %v526_v36 = vsel %vm358_vm0, %v521_v27, %v525_v29  ;;  %v425_v51 = vor.u32 %v424_v40, %v420_v30  ;;  %v537_v52 = vrot.slane %v535_v42, 1  ;;  %v439_v54 = vshll.u32 %v2143_v44, 16  ;;  %v2178_v29 = vld [vmem:[%s2020_s22 + $0xc8] ss:$0 sps:$4 sm:$0x11]   ;;  %v2189_v42 = vld [vmem:[%s2020_s22] sm:$0xff]  }
  0x36   : > { %583 = vrot.lane.b32.xlu1 %v418_v26, %s1974_s23  ;;  %v533_v55 = vor.u32 %v532_v45, %v528_v35  ;;  %v436_v56 = vrot.slane %v434_v48, 1  ;;  %v540_v58 = vshrl.u32 %v2148_v49, 16  ;;  %v542_v59 = vshll.u32 %v2148_v49, 16 }
  0x37   : > { %v430_v60 = vsel %vm358_vm0, %v425_v51, %v429_v41  ;;  %v441_v61 = vrot.slane %v439_v54, 1  ;;  %v547_v9 = vshll.u32 %v2152_v57, 16  ;;  %v444_v12 = vshrl.u32 %v2158_v63, 16 }
  0x38   : > { %v538_v5 = vsel %vm358_vm0, %v533_v55, %v537_v52  ;;  %v437_v6 = vor.u32 %v436_v56, %v432_v47  ;;  %v544_v8 = vrot.slane %v542_v59, 1  ;;  %v446_v14 = vshll.u32 %v2158_v63, 16  ;;  %v2192_v47 = vld [vmem:[%s2020_s22 + $0x68] ss:$0 sps:$4 sm:$0x11]  }
  0x39   : > { %601 = vrot.lane.b32.xlu0 %v526_v36, %s1974_s23  ;;  %v549_v19 = vrot.slane %v547_v9, 1  ;;  %v451_v27 = vshll.u32 %v2165_v10, 16  ;;  %v552_v30 = vshrl.u32 %v2170_v16, 16  ;;  %v554_v32 = vshll.u32 %v2170_v16, 16 }
  0x3a   : > { %585 = vrot.lane.b32.xlu1 %v430_v60, %s1974_s23  ;;  %v442_v17 = vsel %vm358_vm0, %v437_v6, %v441_v61  ;;  %v545_v18 = vor.u32 %v544_v8, %v540_v58  ;;  %v448_v26 = vrot.slane %v446_v14, 1  ;;  %v456_v35 = vshrl.u32 %v2174_v21, 16  ;;  %v2198_v56 = vld [vmem:[%s2020_s22 + $0x8] ss:$0 sps:$4 sm:$0x11]   ;;  %v1894_v61 = vld [vmem:[#allocation2 + $0x98] sm:$0xff]  }
  0x3b   : > { %v453_v37 = vrot.slane %v451_v27, 1  ;;  %v559_v40 = vshll.u32 %v2178_v29, 16  ;;  %v458_v41 = vshll.u32 %v2174_v21, 16  ;;  %v556_v45 = vrot.slane %v554_v32, 1  ;;  %v1895_v14 = vld [vmem:[#allocation2 + $0x90] sm:$0xff]   ;;  %1824 = vmatpush1.bf16.msra.mxu1 %v1894_v61  ;;  %891 = vmatpush1.bf16.msra.mxu0 %v1894_v61 }
  0x3c   : > { %v550_v31 = vsel %vm358_vm0, %v545_v18, %v549_v19  ;;  %v449_v36 = vor.u32 %v448_v26, %v444_v12  ;;  %v463_v55 = vshll.u32 %v2192_v47, 16  ;;  %v360_v58 = vshrl.u32 %v2189_v42, 16  ;;  %1813 = vmatprep.subr.bf16.mxu1 %v1973_v0  ;;  %892 = vmatprep.subr.bf16.mxu0 %v1973_v0 }
  0x3d   : > { %603 = vrot.lane.b32.xlu0 %v538_v5, %s1974_s23  ;;  %v561_v51 = vrot.slane %v559_v40, 1  ;;  %v460_v52 = vrot.slane %v458_v41, 1  ;;  %v557_v54 = vor.u32 %v556_v45, %v552_v30  ;;  %v362_v59 = vshll.u32 %v2189_v42, 16  ;;  %v1900_v40 = vld [vmem:[#allocation2 + $0x68] sm:$0xff]   ;;  %v1901_v41 = vld [vmem:[#allocation2 + $0x60] sm:$0xff]   ;;  %v1902_v45 = vld [vmem:[#allocation2 + $0xb8] sm:$0xff]  }
  0x3e   : > { %587 = vrot.lane.b32.xlu1 %v442_v17, %s1974_s23  ;;  %v454_v48 = vsel %vm358_vm0, %v449_v36, %v453_v37  ;;  %v639_v5 = vrot.slane %v2023_v1, 1  ;;  %v465_v8 = vrot.slane %v463_v55, 1  ;;  %v367_v12 = vshll.u32 %v2198_v56, 16  ;;  %v1897_v36 = vld [vmem:[#allocation2 + $0x80] sm:$0xff]   ;;  %v1899_v37 = vld [vmem:[#allocation2 + $0x70] sm:$0xff]  }
  0x3f   : > { %v461_v60 = vor.u32 %v460_v52, %v456_v35  ;;  %v562_v6 = vsel %vm358_vm0, %v557_v54, %v561_v51  ;;  %v364_v9 = vrot.slane %v362_v59, 1  ;;  %v640_v26 = vrot.slane %v2026_v2, 1  ;;  %1825 = vmatpush1.bf16.msra.mxu1 %v1895_v14  ;;  %893 = vmatpush1.bf16.msra.mxu0 %v1895_v14  ;;  %v2242_v51 = vld [vmem:[%s2020_s22 + $0xcc] sm:$0xff]   ;;  %v2245_v52 = vld [vmem:[%s2020_s22 + $0xd4] ss:$0 sps:$4 sm:$0x11]  }
  0x40   : > { %v369_v19 = vrot.slane %v367_v12, 1  ;;  %v615_v30 = vrot.slane %v2029_v3, 1  ;;  %v616_v35 = vrot.slane %v2035_v7, 1  ;;  %1814 = vmatprep.subr.bf16.mxu1 %v1973_v0  ;;  %894 = vmatprep.subr.bf16.mxu0 %v1973_v0  ;;  %v1898_v7 = vld [vmem:[#allocation2 + $0x78] sm:$0xff]   ;;  %v1904_v54 = vld [vmem:[#allocation2 + $0xa8] sm:$0xff]   ;;  %v564_v55 = vshrl.u32 %v2242_v51, 16 }
  0x41   : > { %605 = vrot.lane.b32.xlu0 %v550_v31, %s1974_s23  ;;  %v466_v17 = vsel %vm358_vm0, %v461_v60, %v465_v8  ;;  %v365_v18 = vor.u32 %v364_v9, %v360_v58  ;;  %v1896_v31 = vld [vmem:[#allocation2 + $0x88] sm:$0xff]   ;;  %v2215_v32 = vsel %vm611_vm1, %v639_v5, %v640_v26  ;;  %v566_v58 = vshll.u32 %v2242_v51, 16  ;;  %v1905_v5 = vld [vmem:[#allocation2 + $0xa0] sm:$0xff]   ;;  %v1906_v14 = vld [vmem:[#allocation2 + $0x38] sm:$0xff]  }
  0x42   : > { %589 = vrot.lane.b32.xlu1 %v454_v48, %s1974_s23  ;;  %1745 = vmatprep.mubr.msk.bf16.mxu1 %vm666_vm2, %v2215_v32  ;;  %v2223_v2 = vsel %vm611_vm1, %v615_v30, %v616_v35  ;;  %v1903_v48 = vld [vmem:[#allocation2 + $0xb0] sm:$0xff]   ;;  %v571_v59 = vshll.u32 %v2245_v52, 16  ;;  %v642_v9 = vrot.slane %v2041_v13, 1  ;;  %v643_v12 = vrot.slane %v2044_v15, 1  ;;  %v1907_v30 = vld [vmem:[#allocation2 + $0xf8] sm:$0xff]  }
  0x43   : > { %v370_v27 = vsel %vm358_vm0, %v365_v18, %v369_v19  ;;  %1737 = vmatprep.mubr.msk.bf16.mxu0 %vm666_vm2, %v2223_v2  ;;  %1826 = vmatpush1.bf16.msra.mxu1 %v1896_v31  ;;  %v568_v60 = vrot.slane %v566_v58, 1  ;;  %v618_v26 = vrot.slane %v2049_v20, 1  ;;  %v1908_v15 = vld [vmem:[#allocation2 + $0x30] sm:$0xff]  }
  0x44   : > { %895 = vmatpush1.bf16.msra.mxu0 %v1896_v31  ;;  %1815 = vmatprep.subr.bf16.mxu1 %v1973_v0  ;;  %v573_v61 = vrot.slane %v571_v59, 1  ;;  %v2261_v18 = vsel %vm611_vm1, %v642_v9, %v643_v12  ;;  %v648_v59 = vrot.slane %v2082_v46, 1  ;;  %v625_v9 = vrot.slane %v2104_v4, 1  ;;  %v1915_v12 = vld [vmem:[#allocation2 + $0xd8] sm:$0xff]   ;;  %v1916_v4 = vld [vmem:[#allocation2 + $0x10] sm:$0xff]  }
  0x45   : > { %607 = vrot.lane.b32.xlu0 %v562_v6, %s1974_s23  ;;  %896 = vmatprep.subr.bf16.mxu0 %v1973_v0  ;;  %v569_v6 = vor.u32 %v568_v60, %v564_v55  ;;  %v1912_v55 = vld [vmem:[#allocation2 + $0x20] sm:$0xff]  }
  0x46   : > { %591 = vrot.lane.b32.xlu1 %v466_v17, %s1974_s23 }
  0x47   : > { %1827 = vmatpush1.bf16.msra.mxu1 %v1897_v36  ;;  %v574_v8 = vsel %vm358_vm0, %v569_v6, %v573_v61  ;;  %v1913_v61 = vld [vmem:[#allocation2 + $0xe0] sm:$0xff]   ;;  %v1914_v6 = vld [vmem:[#allocation2 + $0x18] sm:$0xff]  }
  0x48   : > { %897 = vmatpush1.bf16.msra.mxu0 %v1897_v36  ;;  %1816 = vmatprep.subr.bf16.mxu1 %v1973_v0 }
  0x49   : > { %575 = vrot.lane.b32.xlu0 %v370_v27, %s1974_s23  ;;  %898 = vmatprep.subr.bf16.mxu0 %v1973_v0  ;;  %v619_v27 = vrot.slane %v2053_v23, 1  ;;  %v645_v23 = vrot.slane %v2059_v28, 1 }
  0x4a   : > { %609 = vrot.lane.b32.xlu1 %v574_v8, %s1974_s23  ;;  %v624_v8 = vrot.slane %v2086_v50, 1 }
  0x4b   : > { %1828 = vmatpush1.bf16.msra.mxu1 %v1898_v7  ;;  %v2278_v36 = vsel %vm611_vm1, %v618_v26, %v619_v27  ;;  %v651_v26 = vrot.slane %v2101_v62, 1  ;;  %v652_v27 = vrot.slane %v2109_v11, 1  ;;  %v1918_v11 = vld [vmem:[#allocation2 + $0x8] sm:$0xff]  }
  0x4c   : > { %899 = vmatpush1.bf16.msra.mxu0 %v1898_v7  ;;  %1817 = vmatprep.subr.bf16.mxu1 %v1973_v0  ;;  %v646_v7 = vrot.slane %v2065_v34, 1 }
  0x4d   : > { %900 = vmatprep.subr.bf16.mxu0 %v1973_v0 }
  0x4e   : > { %v2292_v34 = vsel %vm611_vm1, %v645_v23, %v646_v7  ;;  %v628_v23 = vrot.slane %v2121_v24, 1  ;;  %v1919_v7 = vld [vmem:[#allocation2 + $0xc8] sm:$0xff]   ;;  %v654_v24 = vrot.slane %v2124_v25, 1 }
  0x4f   : > { %1829 = vmatpush1.bf16.msra.mxu1 %v1899_v37 }
  0x50   : > { %901 = vmatpush1.bf16.msra.mxu0 %v1899_v37  ;;  %1818 = vmatprep.subr.bf16.mxu1 %v1973_v0 }
  0x51   : > { %902 = vmatprep.subr.bf16.mxu0 %v1973_v0 }
  0x53   : > { %1830 = vmatpush1.bf16.msra.mxu1 %v1900_v40 }
  0x54   : > { %903 = vmatpush1.bf16.msra.mxu0 %v1900_v40  ;;  %1819 = vmatprep.subr.bf16.mxu1 %v1973_v0  ;;  %v1909_v40 = vld [vmem:[#allocation2 + $0xf0] sm:$0xff]  }
  0x55   : > { %904 = vmatprep.subr.bf16.mxu0 %v1973_v0 }
  0x57   : > { %1831 = vmatpush1.bf16.msra.mxu1 %v1901_v41 }
  0x58   : > { %905 = vmatpush1.bf16.msra.mxu0 %v1901_v41  ;;  %1820 = vmatprep.subr.bf16.mxu1 %v1973_v0  ;;  %v1910_v41 = vld [vmem:[#allocation2 + $0x28] sm:$0xff]  }
  0x59   : > { %914 = vmatprep.subr.bf16.mxu0 %v1973_v0 }
  0x5b   : > { %1832 = vmatpush2.bf16.msra.mxu1 %v1902_v45 }
  0x5c   : > { %915 = vmatpush2.bf16.msra.mxu0 %v1902_v45  ;;  %1821 = vmatprep.subr.bf16.mxu1 %v1973_v0  ;;  %v621_v45 = vrot.slane %v2070_v38, 1 }
  0x5d   : > { %916 = vmatprep.subr.bf16.mxu0 %v1973_v0 }
  0x5f   : > { %1833 = vmatpush2.bf16.msra.mxu1 %v1903_v48 }
  0x60   : > { %917 = vmatpush2.bf16.msra.mxu0 %v1903_v48  ;;  %1822 = vmatprep.subr.bf16.mxu1 %v1973_v0  ;;  %v622_v48 = vrot.slane %v2077_v43, 1  ;;  %v649_v43 = vrot.slane %v2090_v53, 1 }
  0x61   : > { %918 = vmatprep.subr.bf16.mxu0 %v1973_v0 }
  0x62   : > { %v2308_v60 = vsel %vm611_vm1, %v621_v45, %v622_v48  ;;  %v2319_v53 = vsel %vm611_vm1, %v648_v59, %v649_v43  ;;  %v1920_v45 = vld [vmem:[#allocation2] sm:$0xff]   ;;  %v1922_v59 = vld [vmem:[#allocation2 + $0x58] sm:$0xff]  }
  0x63   : > { %1834 = vmatpush2.bf16.msra.mxu1 %v1904_v54  ;;  %v1921_v48 = vld [vmem:[#allocation2 + $0xc0] sm:$0xff]   ;;  %v1923_v43 = vld [vmem:[#allocation2 + $0x118] sm:$0xff]  }
  0x64   : > { %919 = vmatpush2.bf16.msra.mxu0 %v1904_v54  ;;  %1823 = vmatprep.subr.bf16.mxu1 %v1973_v0  ;;  %v1911_v54 = vld [vmem:[#allocation2 + $0xe8] sm:$0xff]  }
  0x65   : > { %920 = vmatprep.subr.bf16.mxu0 %v1973_v0 }
  0x67   : > { %1835 = vmatpush2.bf16.msra.mxu1 %v1905_v5 }
  0x68   : > { %921 = vmatpush2.bf16.msra.mxu0 %v1905_v5  ;;  %1126 = vmatprep.subr.bf16.mxu1 %v1973_v0 }
  0x69   : > { %1387 = vmatprep.subr.bf16.mxu0 %v1973_v0 }
  0x9b   : > { %v594_v17 = vpop.permute.xlu0 %593 }
  0x9c   : > { %v2265_v19 = vsel %vm666_vm2, %v2023_v1, %v594_v17  ;;  %v596_v35 = vpop.permute.xlu1 %595  ;;  %v2333_v17 = vsel %vm611_vm1, %v624_v8, %v625_v9  ;;  %v1924_v8 = vld [vmem:[#allocation2 + $0x50] sm:$0xff]  }
  0x9d   : > { %987 = vmatmul.mubr.bf16.vlgmr.msra.gmra.mxu1 %v2265_v19  ;;  %v2285_v37 = vsel %vm666_vm2, %v2041_v13, %v596_v35  ;;  %v627_v35 = vrot.slane %v2117_v22, 1  ;;  %v1925_v9 = vld [vmem:[#allocation2 + $0x110] sm:$0xff]  }
  0x9e   : > { %1127 = vmatpush1.bf16.msra.mxu1 %v1906_v14  ;;  %1746 = vmatprep.mubr.msk.bf16.mxu1 %vm666_vm2, %v2261_v18 }
  0x9f   : > { %v578_v31 = vpop.permute.xlu0 %577  ;;  %1128 = vmatprep.subr.bf16.mxu1 %v1973_v0 }
  0xa0   : > { %v2275_v1 = vsel %vm666_vm2, %v2029_v3, %v578_v31  ;;  %v580_v3 = vpop.permute.xlu1 %579  ;;  %v2347_v31 = vsel %vm611_vm1, %v651_v26, %v652_v27  ;;  %v1926_v26 = vld [vmem:[#allocation2 + $0x48] sm:$0xff]  }
  0xa1   : > { %923 = vmatmul.mubr.bf16.vlgmr.msra.gmra.mxu0 %v2275_v1  ;;  %v2299_v13 = vsel %vm666_vm2, %v2049_v20, %v580_v3  ;;  %v655_v3 = vrot.slane %v2132_v33, 1  ;;  %v630_v33 = vrot.slane %v2138_v39, 1  ;;  %v1927_v27 = vld [vmem:[#allocation2 + $0x108] sm:$0xff]  }
  0xa2   : > { %1388 = vmatpush1.bf16.msra.mxu0 %v1907_v30  ;;  %1129 = vmatpush1.bf16.msra.mxu1 %v1908_v15  ;;  %v1917_v30 = vld [vmem:[#allocation2 + $0xd0] sm:$0xff]  }
  0xa3   : > { %1389 = vmatprep.subr.bf16.mxu0 %v1973_v0  ;;  %1738 = vmatprep.mubr.msk.bf16.mxu0 %vm666_vm2, %v2278_v36  ;;  %v598_v58 = vpop.permute.xlu0 %597 }
  0xa4   : > { %1130 = vmatprep.subr.bf16.mxu1 %v1973_v0  ;;  %v2313_v20 = vsel %vm666_vm2, %v2059_v28, %v598_v58  ;;  %v582_v5 = vpop.permute.xlu1 %581  ;;  %v631_v58 = vrot.slane %v2143_v44, 1  ;;  %v657_v44 = vrot.slane %v2148_v49, 1 }
  0xa5   : > { %995 = vmatmul.mubr.bf16.gmra.mxu1 %v2285_v37  ;;  %v2327_v28 = vsel %vm666_vm2, %v2070_v38, %v582_v5 }
  0xa6   : > { %1390 = vmatpush1.bf16.msra.mxu0 %v1909_v40  ;;  %1131 = vmatpush1.bf16.msra.mxu1 %v1910_v41  ;;  %v2360_v41 = vsel %vm611_vm1, %v627_v35, %v628_v23  ;;  %v2388_v5 = vsel %vm611_vm1, %v630_v33, %v631_v58  ;;  %v1928_v35 = vld [vmem:[#allocation2 + $0x40] sm:$0xff]  }
  0xa7   : > { %1391 = vmatprep.subr.bf16.mxu0 %v1973_v0  ;;  %1747 = vmatprep.mubr.msk.bf16.mxu1 %vm666_vm2, %v2292_v34  ;;  %v600_v14 = vpop.permute.xlu0 %599  ;;  %v1929_v23 = vld [vmem:[#allocation2 + $0x100] sm:$0xff]  }
  0xa8   : > { %1132 = vmatprep.subr.bf16.mxu1 %v1973_v0  ;;  %v2341_v38 = vsel %vm666_vm2, %v2082_v46, %v600_v14  ;;  %v584_v15 = vpop.permute.xlu1 %583 }
  0xa9   : > { %931 = vmatmul.mubr.bf16.gmra.mxu0 %v2299_v13  ;;  %v2355_v46 = vsel %vm666_vm2, %v2086_v50, %v584_v15 }
  0xaa   : > { %1392 = vmatpush1.bf16.msra.mxu0 %v1911_v54  ;;  %1133 = vmatpush1.bf16.msra.mxu1 %v1912_v55  ;;  %v2374_v55 = vsel %vm611_vm1, %v654_v24, %v655_v3  ;;  %v637_v24 = vrot.slane %v2192_v47, 1 }
  0xab   : > { %1739 = vmatprep.mubr.msk.bf16.mxu0 %vm666_vm2, %v2308_v60  ;;  %1393 = vmatprep.subr.bf16.mxu0 %v1973_v0  ;;  %v602_v40 = vpop.permute.xlu0 %601 }
  0xac   : > { %1134 = vmatprep.subr.bf16.mxu1 %v1973_v0  ;;  %v2369_v50 = vsel %vm666_vm2, %v2101_v62, %v602_v40  ;;  %v586_v54 = vpop.permute.xlu1 %585  ;;  %v636_v40 = vrot.slane %v2174_v21, 1 }
  0xad   : > { %1003 = vmatmul.mubr.bf16.gmra.mxu1 %v2313_v20  ;;  %v2383_v62 = vsel %vm666_vm2, %v2117_v22, %v586_v54  ;;  %v613_v54 = vrot.slane %v2198_v56, 1 }
  0xae   : > { %1394 = vmatpush1.bf16.msra.mxu0 %v1913_v61  ;;  %1748 = vmatprep.mubr.msk.bf16.mxu1 %vm666_vm2, %v2319_v53 }
  0xaf   : > { %1135 = vmatpush1.bf16.msra.mxu1 %v1914_v6  ;;  %1395 = vmatprep.subr.bf16.mxu0 %v1973_v0  ;;  %v604_v61 = vpop.permute.xlu0 %603  ;;  %v658_v6 = vrot.slane %v2152_v57, 1  ;;  %v633_v57 = vrot.slane %v2158_v63, 1 }
  0xb0   : > { %1136 = vmatprep.subr.bf16.mxu1 %v1973_v0  ;;  %v2397_v22 = vsel %vm666_vm2, %v2124_v25, %v604_v61 }
  0xb1   : > { %939 = vmatmul.mubr.bf16.gmra.mxu0 %v2327_v28  ;;  %v2402_v14 = vsel %vm611_vm1, %v657_v44, %v658_v6 }
  0xb2   : > { %1396 = vmatpush1.bf16.msra.mxu0 %v1915_v12  ;;  %1740 = vmatprep.mubr.msk.bf16.mxu0 %vm666_vm2, %v2333_v17  ;;  %v588_v12 = vpop.permute.xlu1 %587 }
  0xb3   : > { %1137 = vmatpush1.bf16.msra.mxu1 %v1916_v4  ;;  %1397 = vmatprep.subr.bf16.mxu0 %v1973_v0  ;;  %v634_v4 = vrot.slane %v2165_v10, 1  ;;  %v2411_v25 = vsel %vm666_vm2, %v2138_v39, %v588_v12  ;;  %v660_v10 = vrot.slane %v2170_v16, 1 }
  0xb4   : > { %1138 = vmatprep.subr.bf16.mxu1 %v1973_v0 }
  0xb5   : > { %1011 = vmatmul.mubr.bf16.gmra.mxu1 %v2341_v38  ;;  %v2416_v15 = vsel %vm611_vm1, %v633_v57, %v634_v4 }
  0xb6   : > { %1749 = vmatprep.mubr.msk.bf16.mxu1 %vm666_vm2, %v2347_v31  ;;  %1398 = vmatpush1.bf16.msra.mxu0 %v1917_v30  ;;  %v606_v30 = vpop.permute.xlu0 %605 }
  0xb7   : > { %1139 = vmatpush1.bf16.msra.mxu1 %v1918_v11  ;;  %1399 = vmatprep.subr.bf16.mxu0 %v1973_v0  ;;  %v661_v11 = vrot.slane %v2178_v29, 1  ;;  %v2425_v39 = vsel %vm666_vm2, %v2148_v49, %v606_v30 }
  0xb8   : > { %1140 = vmatprep.subr.bf16.mxu1 %v1973_v0 }
  0xb9   : > { %947 = vmatmul.mubr.bf16.gmra.mxu0 %v2355_v46  ;;  %v2430_v29 = vsel %vm611_vm1, %v660_v10, %v661_v11 }
  0xba   : > { %1741 = vmatprep.mubr.msk.bf16.mxu0 %vm666_vm2, %v2360_v41  ;;  %1400 = vmatpush1.bf16.msra.mxu0 %v1919_v7  ;;  %v590_v7 = vpop.permute.xlu1 %589  ;;  %v608_v3 = vpop.permute.xlu0 %607 }
  0xbb   : > { %1141 = vmatpush1.bf16.msra.mxu1 %v1920_v45  ;;  %1401 = vmatprep.subr.bf16.mxu0 %v1973_v0  ;;  %v689_v49 = vsel %vm666_vm2, %v2158_v63, %v590_v7  ;;  %v638_v45 = vsel %vm611_vm1, %v636_v40, %v637_v24 }
  0xbc   : > { %1150 = vmatprep.subr.bf16.mxu1 %v1973_v0 }
  0xbd   : > { %1019 = vmatmul.mubr.bf16.gmra.mxu1 %v2369_v50 }
  0xbe   : > { %1750 = vmatprep.mubr.msk.bf16.mxu1 %vm666_vm2, %v2374_v55  ;;  %1402 = vmatpush1.bf16.msra.mxu0 %v1921_v48  ;;  %v612_v48 = vrot.slane %v2189_v42, 1  ;;  %v592_v47 = vpop.permute.xlu1 %591  ;;  %v576_v58 = vpop.permute.xlu0 %575 }
  0xbf   : > { %1151 = vmatpush2.bf16.msra.mxu1 %v1922_v59  ;;  %1411 = vmatprep.subr.bf16.mxu0 %v1973_v0  ;;  %v692_v33 = vsel %vm666_vm2, %v2174_v21, %v592_v47  ;;  %v668_v56 = vsel %vm666_vm2, %v2189_v42, %v576_v58  ;;  %v664_v21 = vrot.slane %v2245_v52, 1 }
  0xc0   : > { %1152 = vmatprep.subr.bf16.mxu1 %v1973_v0  ;;  %v614_v63 = vsel %vm611_vm1, %v612_v48, %v613_v54 }
  0xc1   : > { %955 = vmatmul.mubr.bf16.gmra.mxu0 %v2383_v62 }
  0xc2   : > { %1742 = vmatprep.mubr.msk.bf16.mxu0 %vm666_vm2, %v2388_v5  ;;  %1412 = vmatpush2.bf16.msra.mxu0 %v1923_v43 }
  0xc3   : > { %1153 = vmatpush2.bf16.msra.mxu1 %v1924_v8  ;;  %1413 = vmatprep.subr.bf16.mxu0 %v1973_v0 }
  0xc4   : > { %1154 = vmatprep.subr.bf16.mxu1 %v1973_v0 }
  0xc5   : > { %1027 = vmatmul.mubr.bf16.gmra.mxu1 %v2397_v22 }
  0xc6   : > { %1751 = vmatprep.mubr.msk.bf16.mxu1 %vm666_vm2, %v2402_v14  ;;  %1414 = vmatpush2.bf16.msra.mxu0 %v1925_v9 }
  0xc7   : > { %1155 = vmatpush2.bf16.msra.mxu1 %v1926_v26  ;;  %1415 = vmatprep.subr.bf16.mxu0 %v1973_v0 }
  0xc8   : > { %1156 = vmatprep.subr.bf16.mxu1 %v1973_v0 }
  0xc9   : > { %963 = vmatmul.mubr.bf16.gmra.mxu0 %v2411_v25 }
  0xca   : > { %1743 = vmatprep.mubr.msk.bf16.mxu0 %vm666_vm2, %v2416_v15  ;;  %1416 = vmatpush2.bf16.msra.mxu0 %v1927_v27 }
  0xcb   : > { %1157 = vmatpush2.bf16.msra.mxu1 %v1928_v35  ;;  %1417 = vmatprep.subr.bf16.mxu0 %v1973_v0  ;;  %v2445_v0 = vsel %vm666_vm2, %v2170_v16, %v608_v3  ;;  %v663_v16 = vrot.slane %v2242_v51, 1 }
  0xcd   : > { %1035 = vmatmul.mubr.bf16.gmra.mxu1 %v2425_v39  ;;  %v665_v42 = vsel %vm611_vm1, %v663_v16, %v664_v21 }
  0xce   : > { %1752 = vmatprep.mubr.msk.bf16.mxu1 %vm666_vm2, %v2430_v29  ;;  %1418 = vmatpush2.bf16.msra.mxu0 %v1929_v23 }
  0xd1   : > { %971 = vmatmul.mubr.bf16.gmra.mxu0 %v689_v49 }
  0xd2   : > { %1744 = vmatprep.mubr.msk.bf16.mxu0 %vm666_vm2, %v638_v45 }
  0xd5   : > { %1043 = vmatmul.mubr.bf16.gmra.mxu1 %v2445_v0 }
  0xd6   : > { %1765 = vmatprep.mubr.msk.bf16.mxu1 %vm666_vm2, %v614_v63 }
  0xd9   : > { %979 = vmatmul.mubr.bf16.gmra.mxu0 %v692_v33 }
  0xda   : > { %1793 = vmatprep.mubr.msk.bf16.mxu0 %vm666_vm2, %v2278_v36 }
  0xdd   : > { %1159 = vmatmul.mubr.bf16.vlgmr.msra.gmra.mxu1 %v668_v56 }
  0xde   : > { %1766 = vmatprep.mubr.msk.bf16.mxu1 %vm666_vm2, %v2223_v2 }
  0xe1   : > { %1420 = vmatmul.mubr.bf16.vlgmr.msra.gmra.mxu0 %v2299_v13 }
  0xe2   : > { %1794 = vmatprep.mubr.msk.bf16.mxu0 %vm666_vm2, %v2308_v60 }
  0xe5   : > { %1167 = vmatmul.mubr.bf16.gmra.mxu1 %v2275_v1 }
  0xe6   : > { %1767 = vmatprep.mubr.msk.bf16.mxu1 %vm666_vm2, %v2278_v36 }
  0xe9   : > { %1428 = vmatmul.mubr.bf16.gmra.mxu0 %v2327_v28 }
  0xea   : > { %1795 = vmatprep.mubr.msk.bf16.mxu0 %vm666_vm2, %v2333_v17 }
  0xed   : > { %1175 = vmatmul.mubr.bf16.gmra.mxu1 %v2299_v13 }
  0xee   : > { %1768 = vmatprep.mubr.msk.bf16.mxu1 %vm666_vm2, %v2308_v60 }
  0xf1   : > { %1436 = vmatmul.mubr.bf16.gmra.mxu0 %v2355_v46 }
  0xf2   : > { %1796 = vmatprep.mubr.msk.bf16.mxu0 %vm666_vm2, %v2360_v41 }
  0xf5   : > { %1183 = vmatmul.mubr.bf16.gmra.mxu1 %v2327_v28 }
  0xf6   : > { %1769 = vmatprep.mubr.msk.bf16.mxu1 %vm666_vm2, %v2333_v17 }
  0xf9   : > { %1444 = vmatmul.mubr.bf16.gmra.mxu0 %v2383_v62 }
  0xfa   : > { %1797 = vmatprep.mubr.msk.bf16.mxu0 %vm666_vm2, %v2388_v5 }
  0xfd   : > { %1191 = vmatmul.mubr.bf16.gmra.mxu1 %v2355_v46 }
  0xfe   : > { %1770 = vmatprep.mubr.msk.bf16.mxu1 %vm666_vm2, %v2360_v41 }
 0x101   : > { %1452 = vmatmul.mubr.bf16.gmra.mxu0 %v2411_v25 }
 0x102   : > { %1798 = vmatprep.mubr.msk.bf16.mxu0 %vm666_vm2, %v2416_v15 }
 0x105   : > { %1199 = vmatmul.mubr.bf16.gmra.mxu1 %v2383_v62 }
 0x106   : > { %1771 = vmatprep.mubr.msk.bf16.mxu1 %vm666_vm2, %v2388_v5 }
 0x109   : > { %1460 = vmatmul.mubr.bf16.gmra.mxu0 %v689_v49 }
 0x10a   : > { %1799 = vmatprep.mubr.msk.bf16.mxu0 %vm666_vm2, %v638_v45 }
 0x10d   : > { %1207 = vmatmul.mubr.bf16.gmra.mxu1 %v2411_v25 }
 0x10e   : > { %1772 = vmatprep.mubr.msk.bf16.mxu1 %vm666_vm2, %v2416_v15 }
 0x111   : > { %1468 = vmatmul.mubr.bf16.gmra.mxu0 %v692_v33 }
 0x112   : > { %1800 = vmatprep.mubr.msk.bf16.mxu0 %vm666_vm2, %v2215_v32 }
 0x115   : > { %1215 = vmatmul.mubr.bf16.gmra.mxu1 %v689_v49 }
 0x116   : > { %1773 = vmatprep.mubr.msk.bf16.mxu1 %vm666_vm2, %v638_v45 }
 0x119   : > { %1476 = vmatmul.mubr.bf16.gmra.mxu0 %v2265_v19 }
 0x11a   : > { %1801 = vmatprep.mubr.msk.bf16.mxu0 %vm666_vm2, %v2261_v18 }
 0x11d   : > { %1223 = vmatmul.mubr.bf16.gmra.mxu1 %v692_v33 }
 0x11e   : > { %1774 = vmatprep.mubr.msk.bf16.mxu1 %vm666_vm2, %v2215_v32  ;;  %v610_v32 = vpop.permute.xlu1 %609 }
 0x11f   : > { %v719_v2 = vsel %vm666_vm2, %v2242_v51, %v610_v32 }
 0x121   : > { %1484 = vmatmul.mubr.bf16.gmra.mxu0 %v2285_v37 }
 0x122   : > { %1802 = vmatprep.mubr.msk.bf16.mxu0 %vm666_vm2, %v2292_v34 }
 0x125   : > { %1231 = vmatmul.mubr.bf16.gmra.mxu1 %v2265_v19 }
 0x126   : > { %1775 = vmatprep.mubr.msk.bf16.mxu1 %vm666_vm2, %v2261_v18 }
 0x129   : > { %1492 = vmatmul.mubr.bf16.gmra.mxu0 %v2313_v20 }
 0x12a   : > { %1803 = vmatprep.mubr.msk.bf16.mxu0 %vm666_vm2, %v2319_v53 }
 0x12d   : > { %1239 = vmatmul.mubr.bf16.gmra.mxu1 %v2285_v37 }
 0x12e   : > { %1776 = vmatprep.mubr.msk.bf16.mxu1 %vm666_vm2, %v2292_v34 }
 0x131   : > { %1500 = vmatmul.mubr.bf16.gmra.mxu0 %v2341_v38 }
 0x132   : > { %1804 = vmatprep.mubr.msk.bf16.mxu0 %vm666_vm2, %v2347_v31 }
 0x135   : > { %1247 = vmatmul.mubr.bf16.gmra.mxu1 %v2313_v20 }
 0x136   : > { %1777 = vmatprep.mubr.msk.bf16.mxu1 %vm666_vm2, %v2319_v53 }
 0x139   : > { %1508 = vmatmul.mubr.bf16.gmra.mxu0 %v2369_v50 }
 0x13a   : > { %1805 = vmatprep.mubr.msk.bf16.mxu0 %vm666_vm2, %v2374_v55 }
 0x13d   : > { %1255 = vmatmul.mubr.bf16.gmra.mxu1 %v2341_v38 }
 0x13e   : > { %1778 = vmatprep.mubr.msk.bf16.mxu1 %vm666_vm2, %v2347_v31 }
 0x141   : > { %1516 = vmatmul.mubr.bf16.gmra.mxu0 %v2397_v22 }
 0x142   : > { %1806 = vmatprep.mubr.msk.bf16.mxu0 %vm666_vm2, %v2402_v14 }
 0x145   : > { %1263 = vmatmul.mubr.bf16.gmra.mxu1 %v2369_v50 }
 0x146   : > { %1779 = vmatprep.mubr.msk.bf16.mxu1 %vm666_vm2, %v2374_v55 }
 0x149   : > { %1524 = vmatmul.mubr.bf16.gmra.mxu0 %v2425_v39 }
 0x14a   : > { %1807 = vmatprep.mubr.msk.bf16.mxu0 %vm666_vm2, %v2430_v29 }
 0x14d   : > { %1271 = vmatmul.mubr.bf16.gmra.mxu1 %v2397_v22 }
 0x14e   : > { %1780 = vmatprep.mubr.msk.bf16.mxu1 %vm666_vm2, %v2402_v14 }
 0x151   : > { %1532 = vmatmul.mubr.bf16.gmra.mxu0 %v2445_v0 }
 0x152   : > { %1808 = vmatprep.mubr.msk.bf16.mxu0 %vm666_vm2, %v665_v42 }
 0x155   : > { %1279 = vmatmul.mubr.bf16.gmra.mxu1 %v2425_v39 }
 0x159   : > { %1540 = vmatmul.mubr.bf16.gmra.mxu0 %v719_v2 }
 0x15d   : > { %v2545_v18 = vpop.f32.mrf.mxu1 }
 0x15f   : > { %v990_v52 = vpop.f32.mrf.mxu1 }
 0x161   : > { %v2547_v19 = vpop.f32.mrf.mxu0  ;;  %v2549_v1 = vpop.f32.mrf.mxu1 }
 0x163   : > { %v926_v36 = vpop.f32.mrf.mxu0  ;;  %v993_v37 = vpop.f32.mrf.mxu1 }
 0x165   : > { %v2551_v34 = vpop.f32.mrf.mxu0  ;;  %v2553_v13 = vpop.f32.mrf.mxu1 }
 0x167   : > { %v929_v60 = vpop.f32.mrf.mxu0  ;;  %v998_v20 = vpop.f32.mrf.mxu1 }
 0x169   : > { %v2555_v53 = vpop.f32.mrf.mxu0  ;;  %v2557_v28 = vpop.f32.mrf.mxu1 }
 0x16b   : > { %v934_v51 = vpop.f32.mrf.mxu0  ;;  %v1001_v17 = vpop.f32.mrf.mxu1 }
 0x16d   : > { %v2559_v38 = vpop.f32.mrf.mxu0  ;;  %v2561_v31 = vpop.f32.mrf.mxu1 }
 0x16f   : > { %v937_v46 = vpop.f32.mrf.mxu0  ;;  %v1006_v41 = vpop.f32.mrf.mxu1 }
 0x171   : > { %v2563_v50 = vpop.f32.mrf.mxu0  ;;  %v2565_v55 = vpop.f32.mrf.mxu1 }
 0x173   : > { %v942_v59 = vpop.f32.mrf.mxu0  ;;  %v1009_v62 = vpop.f32.mrf.mxu1 }
 0x175   : > { %v2567_v43 = vpop.f32.mrf.mxu0  ;;  %v2569_v61 = vpop.f32.mrf.mxu1 }
 0x177   : > { %v945_v5 = vpop.f32.mrf.mxu0  ;;  %v1014_v44 = vpop.f32.mrf.mxu1 }
 0x179   : > { %v2571_v6 = vpop.f32.mrf.mxu0  ;;  %v2573_v8 = vpop.f32.mrf.mxu1 }
 0x17b   : > { %v950_v22 = vpop.f32.mrf.mxu0  ;;  %v1017_v9 = vpop.f32.mrf.mxu1 }
 0x17d   : > { %v2575_v12 = vpop.f32.mrf.mxu0  ;;  %v2577_v14 = vpop.f32.mrf.mxu1 }
 0x17f   : > { %v953_v57 = vpop.f32.mrf.mxu0  ;;  %v1022_v4 = vpop.f32.mrf.mxu1 }
 0x181   : > { %v2579_v26 = vpop.f32.mrf.mxu0  ;;  %v2581_v25 = vpop.f32.mrf.mxu1 }
 0x183   : > { %v958_v27 = vpop.f32.mrf.mxu0  ;;  %v1025_v30 = vpop.f32.mrf.mxu1 }
 0x185   : > { %v2583_v15 = vpop.f32.mrf.mxu0  ;;  %v2585_v10 = vpop.f32.mrf.mxu1 }
 0x187   : > { %v961_v11 = vpop.f32.mrf.mxu0  ;;  %v1030_v35 = vpop.f32.mrf.mxu1 }
 0x189   : > { %v2587_v39 = vpop.f32.mrf.mxu0  ;;  %v2589_v23 = vpop.f32.mrf.mxu1 }
 0x18b   : > { %v966_v7 = vpop.f32.mrf.mxu0  ;;  %v1033_v29 = vpop.f32.mrf.mxu1 }
 0x18d   : > { %v2591_v40 = vpop.f32.mrf.mxu0  ;;  %v2593_v24 = vpop.f32.mrf.mxu1 }
 0x18f   : > { %v969_v49 = vpop.f32.mrf.mxu0  ;;  %v1038_v3 = vpop.f32.mrf.mxu1 }
 0x191   : > { %v2595_v45 = vpop.f32.mrf.mxu0  ;;  %v2597_v48 = vpop.f32.mrf.mxu1 }
 0x193   : > { %v974_v54 = vpop.f32.mrf.mxu0  ;;  %v1041_v0 = vpop.f32.mrf.mxu1 }
 0x195   : > { %v2599_v47 = vpop.f32.mrf.mxu0  ;;  %v2601_v63 = vpop.f32.mrf.mxu1 }
 0x197   : > { %v977_v33 = vpop.f32.mrf.mxu0  ;;  %v1046_v58 = vpop.f32.mrf.mxu1 }
 0x199   : > { %v2603_v56 = vpop.f32.mrf.mxu0  ;;  %v2605_v16 = vpop.f32.mrf.mxu1 }
 0x19b   : > { %v982_v21 = vpop.f32.mrf.mxu0  ;;  %v1049_v42 = vpop.f32.mrf.mxu1 }
 0x19d   : > { %v2607_v32 = vpop.f32.mrf.mxu0  ;;  %v1160_v2 = vpop.f32.mrf.mxu1 }
 0x19e   : > { %v1161_v37 = vadd.f32 %v1160_v2, %v2547_v19 }
 0x19f   : > { %v985_v52 = vpop.f32.mrf.mxu0  ;;  %v1162_v36 = vpop.f32.mrf.mxu1 }
 0x1a1   : > { %v1163_v60 = vpop.f32.mrf.mxu1  ;;  %v1421_v20 = vpop.f32.mrf.mxu0 }
 0x1a2   : > { %v1548_v51 = vadd.f32 %v1421_v20, %v1161_v37  ;;  %v1164_v41 = vadd.f32 %v1163_v60, %v2551_v34 }
 0x1a3   : > { %v1165_v17 = vpop.f32.mrf.mxu1  ;;  %v1423_v46 = vpop.f32.mrf.mxu0 }
 0x1a4   : > { %1580 = vst [vmem:[%s2614_s27] sm:$0xff] %v1548_v51 }
 0x1a5   : > { %v1168_v59 = vpop.f32.mrf.mxu1  ;;  %v1424_v62 = vpop.f32.mrf.mxu0 }
 0x1a6   : > { %v1549_v5 = vadd.f32 %v1424_v62, %v1164_v41  ;;  %v1169_v22 = vadd.f32 %v1168_v59, %v2555_v53 }
 0x1a7   : > { %v1170_v19 = vpop.f32.mrf.mxu1  ;;  %v1426_v44 = vpop.f32.mrf.mxu0 }
 0x1a8   : > { %1581 = vst [vmem:[%s2614_s27 + $0x8] sm:$0xff] %v1549_v5 }
 0x1a9   : > { %v1171_v9 = vpop.f32.mrf.mxu1  ;;  %v1429_v57 = vpop.f32.mrf.mxu0 }
 0x1aa   : > { %v1550_v4 = vadd.f32 %v1429_v57, %v1169_v22  ;;  %v1172_v11 = vadd.f32 %v1171_v9, %v2559_v38 }
 0x1ab   : > { %v1173_v27 = vpop.f32.mrf.mxu1  ;;  %v1431_v30 = vpop.f32.mrf.mxu0 }
 0x1ac   : > { %1582 = vst [vmem:[%s2614_s27 + $0x10] sm:$0xff] %v1550_v4 }
 0x1ad   : > { %v1176_v34 = vpop.f32.mrf.mxu1  ;;  %v1432_v35 = vpop.f32.mrf.mxu0 }
 0x1ae   : > { %v1551_v7 = vadd.f32 %v1432_v35, %v1172_v11  ;;  %v1177_v3 = vadd.f32 %v1176_v34, %v2563_v50 }
 0x1af   : > { %v1178_v29 = vpop.f32.mrf.mxu1  ;;  %v1434_v49 = vpop.f32.mrf.mxu0 }
 0x1b0   : > { %1583 = vst [vmem:[%s2614_s27 + $0x18] sm:$0xff] %v1551_v7 }
 0x1b1   : > { %v1179_v53 = vpop.f32.mrf.mxu1  ;;  %v1437_v54 = vpop.f32.mrf.mxu0 }
 0x1b2   : > { %v1552_v0 = vadd.f32 %v1437_v54, %v1177_v3  ;;  %v1180_v21 = vadd.f32 %v1179_v53, %v2567_v43 }
 0x1b3   : > { %v1181_v33 = vpop.f32.mrf.mxu1  ;;  %v1439_v58 = vpop.f32.mrf.mxu0 }
 0x1b4   : > { %1584 = vst [vmem:[%s2614_s27 + $0x20] sm:$0xff] %v1552_v0 }
 0x1b5   : > { %v1184_v38 = vpop.f32.mrf.mxu1  ;;  %v1440_v42 = vpop.f32.mrf.mxu0 }
 0x1b6   : > { %v1553_v2 = vadd.f32 %v1440_v42, %v1180_v21  ;;  %v1185_v37 = vadd.f32 %v1184_v38, %v2571_v6 }
 0x1b7   : > { %v1186_v52 = vpop.f32.mrf.mxu1  ;;  %v1442_v36 = vpop.f32.mrf.mxu0 }
 0x1b8   : > { %1585 = vst [vmem:[%s2614_s27 + $0x28] sm:$0xff] %v1553_v2 }
 0x1b9   : > { %v1187_v50 = vpop.f32.mrf.mxu1  ;;  %v1445_v60 = vpop.f32.mrf.mxu0 }
 0x1ba   : > { %v1554_v20 = vadd.f32 %v1445_v60, %v1185_v37  ;;  %v1188_v46 = vadd.f32 %v1187_v50, %v2575_v12 }
 0x1bb   : > { %v1189_v51 = vpop.f32.mrf.mxu1  ;;  %v1447_v17 = vpop.f32.mrf.mxu0 }
 0x1bc   : > { %1586 = vst [vmem:[%s2614_s27 + $0x30] sm:$0xff] %v1554_v20 }
 0x1bd   : > { %v1192_v43 = vpop.f32.mrf.mxu1  ;;  %v1448_v41 = vpop.f32.mrf.mxu0 }
 0x1be   : > { %v1555_v59 = vadd.f32 %v1448_v41, %v1188_v46  ;;  %v1193_v19 = vadd.f32 %v1192_v43, %v2579_v26 }
 0x1bf   : > { %v1194_v62 = vpop.f32.mrf.mxu1  ;;  %v1450_v5 = vpop.f32.mrf.mxu0 }
 0x1c0   : > { %1587 = vst [vmem:[%s2614_s27 + $0x38] sm:$0xff] %v1555_v59 }
 0x1c1   : > { %v1195_v6 = vpop.f32.mrf.mxu1  ;;  %v1453_v44 = vpop.f32.mrf.mxu0 }
 0x1c2   : > { %v1556_v22 = vadd.f32 %v1453_v44, %v1193_v19  ;;  %v1196_v4 = vadd.f32 %v1195_v6, %v2583_v15 }
 0x1c3   : > { %v1197_v9 = vpop.f32.mrf.mxu1  ;;  %v1455_v57 = vpop.f32.mrf.mxu0 }
 0x1c4   : > { %1588 = vst [vmem:[%s2614_s27 + $0x40] sm:$0xff] %v1556_v22 }
 0x1c5   : > { %v1200_v12 = vpop.f32.mrf.mxu1  ;;  %v1456_v27 = vpop.f32.mrf.mxu0 }
 0x1c6   : > { %v1557_v30 = vadd.f32 %v1456_v27, %v1196_v4  ;;  %v1201_v35 = vadd.f32 %v1200_v12, %v2587_v39 }
 0x1c7   : > { %v1202_v11 = vpop.f32.mrf.mxu1  ;;  %v1458_v34 = vpop.f32.mrf.mxu0 }
 0x1c8   : > { %1589 = vst [vmem:[%s2614_s27 + $0x48] sm:$0xff] %v1557_v30 }
 0x1c9   : > { %v1203_v26 = vpop.f32.mrf.mxu1  ;;  %v1461_v7 = vpop.f32.mrf.mxu0 }
 0x1ca   : > { %v1558_v29 = vadd.f32 %v1461_v7, %v1201_v35  ;;  %v1204_v53 = vadd.f32 %v1203_v26, %v2591_v40 }
 0x1cb   : > { %v1205_v49 = vpop.f32.mrf.mxu1  ;;  %v1463_v3 = vpop.f32.mrf.mxu0 }
 0x1cc   : > { %1590 = vst [vmem:[%s2614_s27 + $0x50] sm:$0xff] %v1558_v29 }
 0x1cd   : > { %v1208_v15 = vpop.f32.mrf.mxu1  ;;  %v1464_v54 = vpop.f32.mrf.mxu0 }
 0x1ce   : > { %v1559_v0 = vadd.f32 %v1464_v54, %v1204_v53  ;;  %v1209_v21 = vadd.f32 %v1208_v15, %v2595_v45 }
 0x1cf   : > { %v1210_v33 = vpop.f32.mrf.mxu1  ;;  %v1466_v58 = vpop.f32.mrf.mxu0 }
 0x1d0   : > { %1591 = vst [vmem:[%s2614_s27 + $0x58] sm:$0xff] %v1559_v0 }
 0x1d1   : > { %v1211_v39 = vpop.f32.mrf.mxu1  ;;  %v1469_v38 = vpop.f32.mrf.mxu0 }
 0x1d2   : > { %v1560_v42 = vadd.f32 %v1469_v38, %v1209_v21  ;;  %v1212_v36 = vadd.f32 %v1211_v39, %v2599_v47 }
 0x1d3   : > { %v1213_v2 = vpop.f32.mrf.mxu1  ;;  %v1471_v52 = vpop.f32.mrf.mxu0 }
 0x1d4   : > { %1592 = vst [vmem:[%s2614_s27 + $0x60] sm:$0xff] %v1560_v42 }
 0x1d5   : > { %v1216_v40 = vpop.f32.mrf.mxu1  ;;  %v1472_v37 = vpop.f32.mrf.mxu0 }
 0x1d6   : > { %v1561_v50 = vadd.f32 %v1472_v37, %v1212_v36  ;;  %v1217_v51 = vadd.f32 %v1216_v40, %v2603_v56 }
 0x1d7   : > { %v1218_v60 = vpop.f32.mrf.mxu1  ;;  %v1474_v20 = vpop.f32.mrf.mxu0 }
 0x1d8   : > { %1593 = vst [vmem:[%s2614_s27 + $0x68] sm:$0xff] %v1561_v50 }
 0x1d9   : > { %v1219_v45 = vpop.f32.mrf.mxu1  ;;  %v1477_v17 = vpop.f32.mrf.mxu0 }
 0x1da   : > { %v1562_v46 = vadd.f32 %v1477_v17, %v1217_v51  ;;  %v1220_v59 = vadd.f32 %v1219_v45, %v2607_v32 }
 0x1db   : > { %v1221_v43 = vpop.f32.mrf.mxu1  ;;  %v1479_v41 = vpop.f32.mrf.mxu0 }
 0x1dc   : > { %1594 = vst [vmem:[%s2614_s27 + $0x70] sm:$0xff] %v1562_v46 }
 0x1dd   : > { %v1224_v47 = vpop.f32.mrf.mxu1  ;;  %v1480_v62 = vpop.f32.mrf.mxu0 }
 0x1de   : > { %v1563_v5 = vadd.f32 %v1480_v62, %v1220_v59  ;;  %v1225_v44 = vadd.f32 %v1224_v47, %v2545_v18 }
 0x1df   : > { %v1226_v19 = vpop.f32.mrf.mxu1  ;;  %v1482_v6 = vpop.f32.mrf.mxu0 }
 0x1e0   : > { %1595 = vst [vmem:[%s2614_s27 + $0x78] sm:$0xff] %v1563_v5 }
 0x1e1   : > { %v1227_v56 = vpop.f32.mrf.mxu1  ;;  %v1485_v22 = vpop.f32.mrf.mxu0 }
 0x1e2   : > { %v1564_v9 = vadd.f32 %v1485_v22, %v1225_v44  ;;  %v1228_v12 = vadd.f32 %v1227_v56, %v2549_v1 }
 0x1e3   : > { %v1229_v57 = vpop.f32.mrf.mxu1  ;;  %v1487_v4 = vpop.f32.mrf.mxu0 }
 0x1e4   : > { %1596 = vst [vmem:[%s2614_s27 + $0x80] sm:$0xff] %v1564_v9 }
 0x1e5   : > { %v1232_v32 = vpop.f32.mrf.mxu1  ;;  %v1488_v27 = vpop.f32.mrf.mxu0 }
 0x1e6   : > { %v1565_v30 = vadd.f32 %v1488_v27, %v1228_v12  ;;  %v1233_v35 = vadd.f32 %v1232_v32, %v2553_v13 }
 0x1e7   : > { %v1234_v11 = vpop.f32.mrf.mxu1  ;;  %v1490_v34 = vpop.f32.mrf.mxu0 }
 0x1e8   : > { %1597 = vst [vmem:[%s2614_s27 + $0x88] sm:$0xff] %v1565_v30 }
 0x1e9   : > { %v1235_v18 = vpop.f32.mrf.mxu1  ;;  %v1493_v26 = vpop.f32.mrf.mxu0 }
 0x1ea   : > { %v1566_v7 = vadd.f32 %v1493_v26, %v1233_v35  ;;  %v1236_v3 = vadd.f32 %v1235_v18, %v2557_v28 }
 0x1eb   : > { %v1237_v29 = vpop.f32.mrf.mxu1  ;;  %v1495_v49 = vpop.f32.mrf.mxu0 }
 0x1ec   : > { %1598 = vst [vmem:[%s2614_s27 + $0x90] sm:$0xff] %v1566_v7 }
 0x1ed   : > { %v1240_v1 = vpop.f32.mrf.mxu1  ;;  %v1496_v53 = vpop.f32.mrf.mxu0 }
 0x1ee   : > { %v1567_v15 = vadd.f32 %v1496_v53, %v1236_v3  ;;  %v1241_v33 = vadd.f32 %v1240_v1, %v2561_v31 }
 0x1ef   : > { %v1242_v54 = vpop.f32.mrf.mxu1  ;;  %v1498_v0 = vpop.f32.mrf.mxu0 }
 0x1f0   : > { %1599 = vst [vmem:[%s2614_s27 + $0x98] sm:$0xff] %v1567_v15 }
 0x1f1   : > { %v1243_v13 = vpop.f32.mrf.mxu1  ;;  %v1501_v58 = vpop.f32.mrf.mxu0 }
 0x1f2   : > { %v1568_v21 = vadd.f32 %v1501_v58, %v1241_v33  ;;  %v1244_v42 = vadd.f32 %v1243_v13, %v2565_v55 }
 0x1f3   : > { %v1245_v39 = vpop.f32.mrf.mxu1  ;;  %v1503_v38 = vpop.f32.mrf.mxu0 }
 0x1f4   : > { %1600 = vst [vmem:[%s2614_s27 + $0xa0] sm:$0xff] %v1568_v21 }
 0x1f5   : > { %v1248_v28 = vpop.f32.mrf.mxu1  ;;  %v1504_v2 = vpop.f32.mrf.mxu0 }
 0x1f6   : > { %v1569_v52 = vadd.f32 %v1504_v2, %v1244_v42  ;;  %v1249_v37 = vadd.f32 %v1248_v28, %v2569_v61 }
 0x1f7   : > { %v1250_v36 = vpop.f32.mrf.mxu1  ;;  %v1506_v40 = vpop.f32.mrf.mxu0 }
 0x1f8   : > { %1601 = vst [vmem:[%s2614_s27 + $0xa8] sm:$0xff] %v1569_v52 }
 0x1f9   : > { %v1251_v31 = vpop.f32.mrf.mxu1  ;;  %v1509_v50 = vpop.f32.mrf.mxu0 }
 0x1fa   : > { %v1570_v60 = vadd.f32 %v1509_v50, %v1249_v37  ;;  %v1252_v45 = vadd.f32 %v1251_v31, %v2573_v8 }
 0x1fb   : > { %v1253_v20 = vpop.f32.mrf.mxu1  ;;  %v1511_v51 = vpop.f32.mrf.mxu0 }
 0x1fc   : > { %1602 = vst [vmem:[%s2614_s27 + $0xb0] sm:$0xff] %v1570_v60 }
 0x1fd   : > { %v1256_v55 = vpop.f32.mrf.mxu1  ;;  %v1512_v17 = vpop.f32.mrf.mxu0 }
 0x1fe   : > { %v1571_v46 = vadd.f32 %v1512_v17, %v1252_v45  ;;  %v1257_v59 = vadd.f32 %v1256_v55, %v2577_v14 }
 0x1ff   : > { %v1258_v43 = vpop.f32.mrf.mxu1  ;;  %v1514_v41 = vpop.f32.mrf.mxu0 }
 0x200   : > { %1603 = vst [vmem:[%s2614_s27 + $0xb8] sm:$0xff] %v1571_v46 }
 0x201   : > { %v1259_v61 = vpop.f32.mrf.mxu1  ;;  %v1517_v47 = vpop.f32.mrf.mxu0 }
 0x202   : > { %v1572_v62 = vadd.f32 %v1517_v47, %v1257_v59  ;;  %v1260_v6 = vadd.f32 %v1259_v61, %v2581_v25 }
 0x203   : > { %v1261_v5 = vpop.f32.mrf.mxu1  ;;  %v1519_v19 = vpop.f32.mrf.mxu0 }
 0x204   : > { %1604 = vst [vmem:[%s2614_s27 + $0xc0] sm:$0xff] %v1572_v62 }
 0x205   : > { %v1264_v8 = vpop.f32.mrf.mxu1  ;;  %v1520_v44 = vpop.f32.mrf.mxu0 }
 0x206   : > { %v1573_v56 = vadd.f32 %v1520_v44, %v1260_v6  ;;  %v1265_v57 = vadd.f32 %v1264_v8, %v2585_v10 }
 0x207   : > { %v1266_v22 = vpop.f32.mrf.mxu1  ;;  %v1522_v9 = vpop.f32.mrf.mxu0 }
 0x208   : > { %1605 = vst [vmem:[%s2614_s27 + $0xc8] sm:$0xff] %v1573_v56 }
 0x209   : > { %v1267_v14 = vpop.f32.mrf.mxu1  ;;  %v1525_v4 = vpop.f32.mrf.mxu0 }
 0x20a   : > { %v1574_v12 = vadd.f32 %v1525_v4, %v1265_v57  ;;  %v1268_v30 = vadd.f32 %v1267_v14, %v2589_v23 }
 0x20b   : > { %v1269_v32 = vpop.f32.mrf.mxu1  ;;  %v1527_v27 = vpop.f32.mrf.mxu0 }
 0x20c   : > { %1606 = vst [vmem:[%s2614_s27 + $0xd0] sm:$0xff] %v1574_v12 }
 0x20d   : > { %v1272_v25 = vpop.f32.mrf.mxu1  ;;  %v1528_v11 = vpop.f32.mrf.mxu0 }
 0x20e   : > { %v1575_v34 = vadd.f32 %v1528_v11, %v1268_v30  ;;  %v1273_v26 = vadd.f32 %v1272_v25, %v2593_v24 }
 0x20f   : > { %v1274_v35 = vpop.f32.mrf.mxu1  ;;  %v1530_v18 = vpop.f32.mrf.mxu0 }
 0x210   : > { %1607 = vst [vmem:[%s2614_s27 + $0xd8] sm:$0xff] %v1575_v34 }
 0x211   : > { %v1275_v10 = vpop.f32.mrf.mxu1  ;;  %v1533_v7 = vpop.f32.mrf.mxu0 }
 0x212   : > { %v1576_v29 = vadd.f32 %v1533_v7, %v1273_v26  ;;  %v1276_v1 = vadd.f32 %v1275_v10, %v2597_v48 }
 0x213   : > { %v1277_v49 = vpop.f32.mrf.mxu1  ;;  %v1535_v3 = vpop.f32.mrf.mxu0 }
 0x214   : > { %1608 = vst [vmem:[%s2614_s27 + $0xe0] sm:$0xff] %v1576_v29 }
 0x215   : > { %v1280_v23 = vpop.f32.mrf.mxu1  ;;  %v1536_v53 = vpop.f32.mrf.mxu0 }
 0x216   : > { %v1577_v15 = vadd.f32 %v1536_v53, %v1276_v1  ;;  %v1281_v33 = vadd.f32 %v1280_v23, %v2601_v63 }
 0x217   : > { %v1282_v54 = vpop.f32.mrf.mxu1  ;;  %v1538_v0 = vpop.f32.mrf.mxu0 }
 0x218   : > { %1609 = vst [vmem:[%s2614_s27 + $0xe8] sm:$0xff] %v1577_v15 }
 0x219   : > { %v1283_v24 = vpop.f32.mrf.mxu1  ;;  %v1541_v13 = vpop.f32.mrf.mxu0 }
 0x21a   : > { %v1578_v58 = vadd.f32 %v1541_v13, %v1281_v33  ;;  %v1284_v38 = vadd.f32 %v1283_v24, %v2605_v16 }
 0x21b   : > { %v1285_v21 = vpop.f32.mrf.mxu1  ;;  %v1543_v39 = vpop.f32.mrf.mxu0 }
 0x21c   : > { %1610 = vst [vmem:[%s2614_s27 + $0xf0] sm:$0xff] %v1578_v58 }
 0x21d   : > { %v1544_v42 = vpop.f32.mrf.mxu0 }
 0x21e   : > { %v1579_v48 = vadd.f32 %v1544_v42, %v1284_v38 }
 0x21f   : > { %v1546_v28 = vpop.f32.mrf.mxu0 }
 0x220   : > { %1611 = vst [vmem:[%s2614_s27 + $0xf8] sm:$0xff] %v1579_v48 }
 0x221 PF: > { %s13_s9 = sadd.s32 1, %s1968_s9  }
 0x222   : > { %p10_p1 = scmp.ge.s32.totalorder %s13_s9, 4  }
 0x224   :  { %12 = sbr.rel (!%p10_p1) target bundleno = 1 (0x1), region = 65 }
 0x229   :  { %1633 = vsyncpa [#allocation3], 1 }
 0x22a   :  { %1635 = vsyncpa [#allocation3 + $0x1], 1 }

</bundles_post_ra>
